<compile_context>
chip_gen: v5e
topology: v5e:2x2
jax: 0.10.0
libtpu: 0.0.40
codegen_flags: <defaults>
</compile_context>

<pallas_src>
import functools

import jax
import jax.numpy as jnp
import numpy as np
from jax.experimental import pallas as pl
from jax.experimental.pallas import tpu as pltpu


def _opn_num_kernel(p_ref, x_ref, o_ref, *, pairs, group, use_mxu):
    """Pairwise 'num' interaction on one batch tile.

    x_ref: (F, D, TB) VMEM — batch on the 128-lane axis.
    o_ref: (num_ix, TB) VMEM — lane-dense output rows (one per field pair).
    p_ref: if use_mxu: (num_ix, group*D) f32 VMEM block-diagonal reduction weights with the
           pairwise kernel folded into the rows; else (num_ix,) f32 SMEM pairwise kernel.
    """
    D = x_ref.shape[1]
    num_ix = len(pairs)

    if use_mxu:
        # Grouped MXU reduction: for each group of G pairs, stack the element-wise products
        # along sublanes into a (G*D, TB) slab and contract it with the static block-diag
        # weight rows.  The D-reduction rides the otherwise-idle MXU (instead of the XLU),
        # the 'num' kernel scale is folded into the weights (no post-scale mul), and each
        # group produces one sublane-aligned, lane-dense (G, TB) store.
        # TODO(synk): for very large num_ix consider a fori_loop group axis to bound the
        #             unrolled trace / live ranges.
        for g0 in range(0, num_ix, group):
            grp = pairs[g0:g0 + group]
            gg = len(grp)
            cache = {}
            for (i, j) in grp:                      # ref-sliced field loads, dedup per group
                for f in (i, j):
                    if f not in cache:
                        cache[f] = x_ref[f].astype(jnp.float32)          # (D, TB)
            slab = jnp.concatenate([cache[i] * cache[j] for (i, j) in grp],
                                   axis=0)                               # (gg*D, TB)
            w_g = p_ref[g0:g0 + gg, 0:gg * D]                            # (gg, gg*D)
            o_ref[g0:g0 + gg, :] = jnp.dot(
                w_g, slab, preferred_element_type=jnp.float32).astype(o_ref.dtype)
    else:
        # Tiny-batch fallback (TB < 128): per-pair sublane reduce + SMEM scalar scale.
        rows = []
        for idx, (i, j) in enumerate(pairs):
            xi = x_ref[i].astype(jnp.float32)                            # per-slice cast
            xj = x_ref[j].astype(jnp.float32)
            s = jnp.sum(xi * xj, axis=0, keepdims=True)                  # (1, TB)
            rows.append(s * p_ref[idx])                                  # post-reduction scale
        o_ref[...] = jnp.concatenate(rows, axis=0).astype(o_ref.dtype)


def _vmem_capacity_bytes():
    try:
        cap = getattr(pltpu.get_tpu_info(), "vmem_capacity_bytes", None)
        if cap:
            return int(cap)
    except Exception:
        pass
    return 64 * 1024 * 1024          # conservative fallback (v7x per-TC physical VMEM)


def outer_product_network_num(x, kernel, row, col, *, batch_tile=None, group_width=256):
    """x: (B, F, D); kernel: (num_ix, 1); row/col: static int index arrays.

    Returns (B, num_ix) = sum_d x[:, row, d] * x[:, col, d] * kernel[:, 0].
    """
    B, F, D = map(int, x.shape)
    num_ix = int(kernel.shape[0])
    pairs = tuple(zip(np.asarray(row).tolist(), np.asarray(col).tolist()))
    assert len(pairs) == num_ix
    out_dtype = x.dtype
    itemsize = x.dtype.itemsize

    # ---- batch-tile selection (generation aware) ------------------------------------
    vmem_cap = _vmem_capacity_bytes()
    in_row = F * D * itemsize
    out_row = num_ix * itemsize
    budget = min(int(vmem_cap * 0.75), 48 * 1024 * 1024)       # cap total footprint (v7x)
    tb = min((4 * 1024 * 1024) // max(in_row, 1),              # ~4 MiB input blocks
             (budget // 2) // max(2 * (in_row + out_row), 1),  # half the budget for blocks
             4096)                                             # bound in-kernel temporaries
    tb = max(128, (tb // 128) * 128)
    if batch_tile is not None:
        tb = max(128, (int(batch_tile) // 128) * 128)
    if B <= tb:
        tb = B                                                 # single full-extent block
    grid = pl.cdiv(B, tb)                                      # partial last block is masked
    use_mxu = (tb % 128 == 0)

    # ---- layout plumbing: batch on the 128-lane axis ---------------------------------
    # allow_input_fusion (below) asks XLA to fuse this producer into the pallas_call
    # operand rather than materializing an extra HBM pass.
    # TODO(synk): producers that already emit (F, D, B) embeddings can skip this entirely.
    x_t = jnp.transpose(x, (1, 2, 0))                          # (F, D, B)

    group = max(1, min(num_ix, max(1, group_width // D)))      # MXU contraction ~256 wide

    if use_mxu:
        bd = np.zeros((num_ix, group * D), np.float32)         # static block-diagonal mask
        for r in range(num_ix):
            c = (r % group) * D
            bd[r, c:c + D] = 1.0
        p_arg = jnp.asarray(bd) * kernel.reshape(num_ix, 1).astype(jnp.float32)
        p_spec = pl.BlockSpec((num_ix, group * D), lambda b: (0, 0))   # resident in VMEM
    else:
        p_arg = kernel.reshape(num_ix).astype(jnp.float32)             # SMEM-resident
        p_spec = pl.BlockSpec(memory_space=pltpu.MemorySpace.SMEM)

    # ---- VMEM budget: double-buffered blocks + scratch margin, below physical --------
    in_block = F * D * tb * itemsize
    out_block = num_ix * tb * itemsize
    need = 2 * (in_block + out_block)
    vmem_limit = max(32 * 1024 * 1024,
                     min(int(vmem_cap * 0.85), need + 24 * 1024 * 1024))

    out_t = pl.pallas_call(
        functools.partial(_opn_num_kernel, pairs=pairs, group=group, use_mxu=use_mxu),
        out_shape=jax.ShapeDtypeStruct((num_ix, B), out_dtype),
        grid=(grid,),
        in_specs=[
            p_spec,
            pl.BlockSpec((F, D, tb), lambda b: (0, 0, b)),
        ],
        out_specs=pl.BlockSpec((num_ix, tb), lambda b: (0, b)),
        compiler_params=pltpu.CompilerParams(
            dimension_semantics=("parallel",),        # megacore sharding of the batch loop
            allow_input_fusion=[False, True],         # fuse the x relayout into the operand
            vmem_limit_bytes=int(vmem_limit),
        ),
    )(p_arg, x_t)

    return out_t.T                                    # (B, num_ix), already in x.dtype


def make_row_col(num_fields):
    row, col = [], []
    for i in range(num_fields - 1):
        for j in range(i + 1, num_fields):
            row.append(i)
            col.append(j)
    return np.array(row, dtype=np.int32), np.array(col, dtype=np.int32)


def xavier_uniform(key, shape):
    # PyTorch xavier_uniform_ for a 2-D tensor (fan_out, fan_in) = shape
    fan_out, fan_in = shape
    bound = float(np.sqrt(6.0 / (fan_in + fan_out)))
    return jax.random.uniform(key, shape, jnp.float32, minval=-bound, maxval=bound)


def _reference(x, kernel, row, col):
    return jnp.sum(x[:, row, :] * x[:, col, :] * kernel[None, :, :], axis=-1)


if __name__ == "__main__":
    # --- small primary case (tiny-batch fallback path) ---
    B, F, D = 2, 4, 16
    num_ix = F * (F - 1) // 2
    key = jax.random.PRNGKey(0)
    kx, kk = jax.random.split(key)
    x = jax.random.normal(kx, (B, F, D), dtype=jnp.float32)
    kernel = xavier_uniform(kk, (num_ix, 1))          # 'num' kernel_type parameter
    row, col = make_row_col(F)

    out = jax.block_until_ready(outer_product_network_num(x, kernel, row, col))
    assert out.shape == (B, num_ix)
    np.testing.assert_allclose(np.asarray(out), np.asarray(_reference(x, kernel, row, col)),
                               rtol=1e-4, atol=1e-5)

    # --- multi-step grid + masked partial last block + MXU-grouped reduction ---
    B2 = 300
    x2 = jax.random.normal(jax.random.PRNGKey(1), (B2, F, D), dtype=jnp.float32)
    out2 = jax.block_until_ready(
        outer_product_network_num(x2, kernel, row, col, batch_tile=128))
    assert out2.shape == (B2, num_ix)
    np.testing.assert_allclose(np.asarray(out2), np.asarray(_reference(x2, kernel, row, col)),
                               rtol=1e-4, atol=1e-5)

    # --- more fields -> multiple MXU pair-groups (16 + remainder 5) ---
    B3, F3 = 256, 7
    num_ix3 = F3 * (F3 - 1) // 2
    row3, col3 = make_row_col(F3)
    x3 = jax.random.normal(jax.random.PRNGKey(2), (B3, F3, D), dtype=jnp.float32)
    kernel3 = xavier_uniform(jax.random.PRNGKey(3), (num_ix3, 1))
    out3 = jax.block_until_ready(outer_product_network_num(x3, kernel3, row3, col3))
    assert out3.shape == (B3, num_ix3)
    np.testing.assert_allclose(np.asarray(out3),
                               np.asarray(_reference(x3, kernel3, row3, col3)),
                               rtol=1e-4, atol=1e-5)

    # TODO(synk): 'mat' and 'vec' kernel_types not implemented; default 'num' path only.
    print("KERNEL_OK")
</pallas_src>

<mosaic_0001>
module attributes {stable_mosaic.version = 11 : i64} {
  func.func @_opn_num_kernel(%arg0: i32, %arg1: memref<6xf32, #tpu.memory_space<smem>>, %arg2: memref<4x16x2xf32, #tpu.memory_space<vmem>>, %arg3: memref<6x2xf32, #tpu.memory_space<vmem>>) attributes {dimension_semantics = [#tpu.dimension_semantics<parallel>], iteration_bounds = array<i64: 1>, scalar_prefetch = 0 : i64, scratch_operands = 0 : i64, tpu.core_type = #tpu.core_type<tc>, window_params = [{transform_indices = @transform_0, window_bounds = array<i64: 6>}, {transform_indices = @transform_1, window_bounds = array<i64: 4, 16, 2>}, {transform_indices = @transform_2, window_bounds = array<i64: 6, 2>}]} {
    %c0 = arith.constant 0 : index
    %c0_0 = arith.constant 0 : index
    %c0_1 = arith.constant 0 : index
    %0 = vector.load %arg2[%c0, %c0_0, %c0_1] : memref<4x16x2xf32, #tpu.memory_space<vmem>>, vector<1x16x2xf32>
    %1 = vector.shape_cast %0 : vector<1x16x2xf32> to vector<16x2xf32>
    %c1 = arith.constant 1 : index
    %c0_2 = arith.constant 0 : index
    %c0_3 = arith.constant 0 : index
    %2 = vector.load %arg2[%c1, %c0_2, %c0_3] : memref<4x16x2xf32, #tpu.memory_space<vmem>>, vector<1x16x2xf32>
    %3 = vector.shape_cast %2 : vector<1x16x2xf32> to vector<16x2xf32>
    %4 = arith.mulf %1, %3 : vector<16x2xf32>
    %cst = arith.constant dense<0.000000e+00> : vector<2xf32>
    %5 = vector.multi_reduction <add>, %4, %cst [0] : vector<16x2xf32> to vector<2xf32>
    %6 = vector.shape_cast %5 : vector<2xf32> to vector<1x2xf32>
    %c0_4 = arith.constant 0 : index
    %7 = memref.load %arg1[%c0_4] : memref<6xf32, #tpu.memory_space<smem>>
    %8 = vector.broadcast %7 : f32 to vector<1x2xf32>
    %9 = arith.mulf %6, %8 : vector<1x2xf32>
    %c0_5 = arith.constant 0 : index
    %c0_6 = arith.constant 0 : index
    %c0_7 = arith.constant 0 : index
    %10 = vector.load %arg2[%c0_5, %c0_6, %c0_7] : memref<4x16x2xf32, #tpu.memory_space<vmem>>, vector<1x16x2xf32>
    %11 = vector.shape_cast %10 : vector<1x16x2xf32> to vector<16x2xf32>
    %c2 = arith.constant 2 : index
    %c0_8 = arith.constant 0 : index
    %c0_9 = arith.constant 0 : index
    %12 = vector.load %arg2[%c2, %c0_8, %c0_9] : memref<4x16x2xf32, #tpu.memory_space<vmem>>, vector<1x16x2xf32>
    %13 = vector.shape_cast %12 : vector<1x16x2xf32> to vector<16x2xf32>
    %14 = arith.mulf %11, %13 : vector<16x2xf32>
    %cst_10 = arith.constant dense<0.000000e+00> : vector<2xf32>
    %15 = vector.multi_reduction <add>, %14, %cst_10 [0] : vector<16x2xf32> to vector<2xf32>
    %16 = vector.shape_cast %15 : vector<2xf32> to vector<1x2xf32>
    %c1_11 = arith.constant 1 : index
    %17 = memref.load %arg1[%c1_11] : memref<6xf32, #tpu.memory_space<smem>>
    %18 = vector.broadcast %17 : f32 to vector<1x2xf32>
    %19 = arith.mulf %16, %18 : vector<1x2xf32>
    %c0_12 = arith.constant 0 : index
    %c0_13 = arith.constant 0 : index
    %c0_14 = arith.constant 0 : index
    %20 = vector.load %arg2[%c0_12, %c0_13, %c0_14] : memref<4x16x2xf32, #tpu.memory_space<vmem>>, vector<1x16x2xf32>
    %21 = vector.shape_cast %20 : vector<1x16x2xf32> to vector<16x2xf32>
    %c3 = arith.constant 3 : index
    %c0_15 = arith.constant 0 : index
    %c0_16 = arith.constant 0 : index
    %22 = vector.load %arg2[%c3, %c0_15, %c0_16] : memref<4x16x2xf32, #tpu.memory_space<vmem>>, vector<1x16x2xf32>
    %23 = vector.shape_cast %22 : vector<1x16x2xf32> to vector<16x2xf32>
    %24 = arith.mulf %21, %23 : vector<16x2xf32>
    %cst_17 = arith.constant dense<0.000000e+00> : vector<2xf32>
    %25 = vector.multi_reduction <add>, %24, %cst_17 [0] : vector<16x2xf32> to vector<2xf32>
    %26 = vector.shape_cast %25 : vector<2xf32> to vector<1x2xf32>
    %c2_18 = arith.constant 2 : index
    %27 = memref.load %arg1[%c2_18] : memref<6xf32, #tpu.memory_space<smem>>
    %28 = vector.broadcast %27 : f32 to vector<1x2xf32>
    %29 = arith.mulf %26, %28 : vector<1x2xf32>
    %c1_19 = arith.constant 1 : index
    %c0_20 = arith.constant 0 : index
    %c0_21 = arith.constant 0 : index
    %30 = vector.load %arg2[%c1_19, %c0_20, %c0_21] : memref<4x16x2xf32, #tpu.memory_space<vmem>>, vector<1x16x2xf32>
    %31 = vector.shape_cast %30 : vector<1x16x2xf32> to vector<16x2xf32>
    %c2_22 = arith.constant 2 : index
    %c0_23 = arith.constant 0 : index
    %c0_24 = arith.constant 0 : index
    %32 = vector.load %arg2[%c2_22, %c0_23, %c0_24] : memref<4x16x2xf32, #tpu.memory_space<vmem>>, vector<1x16x2xf32>
    %33 = vector.shape_cast %32 : vector<1x16x2xf32> to vector<16x2xf32>
    %34 = arith.mulf %31, %33 : vector<16x2xf32>
    %cst_25 = arith.constant dense<0.000000e+00> : vector<2xf32>
    %35 = vector.multi_reduction <add>, %34, %cst_25 [0] : vector<16x2xf32> to vector<2xf32>
    %36 = vector.shape_cast %35 : vector<2xf32> to vector<1x2xf32>
    %c3_26 = arith.constant 3 : index
    %37 = memref.load %arg1[%c3_26] : memref<6xf32, #tpu.memory_space<smem>>
    %38 = vector.broadcast %37 : f32 to vector<1x2xf32>
    %39 = arith.mulf %36, %38 : vector<1x2xf32>
    %c1_27 = arith.constant 1 : index
    %c0_28 = arith.constant 0 : index
    %c0_29 = arith.constant 0 : index
    %40 = vector.load %arg2[%c1_27, %c0_28, %c0_29] : memref<4x16x2xf32, #tpu.memory_space<vmem>>, vector<1x16x2xf32>
    %41 = vector.shape_cast %40 : vector<1x16x2xf32> to vector<16x2xf32>
    %c3_30 = arith.constant 3 : index
    %c0_31 = arith.constant 0 : index
    %c0_32 = arith.constant 0 : index
    %42 = vector.load %arg2[%c3_30, %c0_31, %c0_32] : memref<4x16x2xf32, #tpu.memory_space<vmem>>, vector<1x16x2xf32>
    %43 = vector.shape_cast %42 : vector<1x16x2xf32> to vector<16x2xf32>
    %44 = arith.mulf %41, %43 : vector<16x2xf32>
    %cst_33 = arith.constant dense<0.000000e+00> : vector<2xf32>
    %45 = vector.multi_reduction <add>, %44, %cst_33 [0] : vector<16x2xf32> to vector<2xf32>
    %46 = vector.shape_cast %45 : vector<2xf32> to vector<1x2xf32>
    %c4 = arith.constant 4 : index
    %47 = memref.load %arg1[%c4] : memref<6xf32, #tpu.memory_space<smem>>
    %48 = vector.broadcast %47 : f32 to vector<1x2xf32>
    %49 = arith.mulf %46, %48 : vector<1x2xf32>
    %c2_34 = arith.constant 2 : index
    %c0_35 = arith.constant 0 : index
    %c0_36 = arith.constant 0 : index
    %50 = vector.load %arg2[%c2_34, %c0_35, %c0_36] : memref<4x16x2xf32, #tpu.memory_space<vmem>>, vector<1x16x2xf32>
    %51 = vector.shape_cast %50 : vector<1x16x2xf32> to vector<16x2xf32>
    %c3_37 = arith.constant 3 : index
    %c0_38 = arith.constant 0 : index
    %c0_39 = arith.constant 0 : index
    %52 = vector.load %arg2[%c3_37, %c0_38, %c0_39] : memref<4x16x2xf32, #tpu.memory_space<vmem>>, vector<1x16x2xf32>
    %53 = vector.shape_cast %52 : vector<1x16x2xf32> to vector<16x2xf32>
    %54 = arith.mulf %51, %53 : vector<16x2xf32>
    %cst_40 = arith.constant dense<0.000000e+00> : vector<2xf32>
    %55 = vector.multi_reduction <add>, %54, %cst_40 [0] : vector<16x2xf32> to vector<2xf32>
    %56 = vector.shape_cast %55 : vector<2xf32> to vector<1x2xf32>
    %c5 = arith.constant 5 : index
    %57 = memref.load %arg1[%c5] : memref<6xf32, #tpu.memory_space<smem>>
    %58 = vector.broadcast %57 : f32 to vector<1x2xf32>
    %59 = arith.mulf %56, %58 : vector<1x2xf32>
    %60 = tpu.concatenate %9, %19, %29, %39, %49, %59 in 0 : vector<1x2xf32>, vector<1x2xf32>, vector<1x2xf32>, vector<1x2xf32>, vector<1x2xf32>, vector<1x2xf32> -> vector<6x2xf32>
    %c0_41 = arith.constant 0 : index
    %c0_42 = arith.constant 0 : index
    %61 = vector.load %arg3[%c0_41, %c0_42] : memref<6x2xf32, #tpu.memory_space<vmem>>, vector<6x2xf32>
    tpu.vector_store %arg3[%c0_41, %c0_42], %60 {strides = array<i32>} : memref<6x2xf32, #tpu.memory_space<vmem>>, vector<6x2xf32>,
    return
  }
  func.func @transform_0(%arg0: i32) -> i32 {
    %c0_i32 = arith.constant 0 : i32
    %c0_i32_0 = arith.constant 0 : i32
    return %c0_i32 : i32
  }
  func.func @transform_1(%arg0: i32) -> (i32, i32, i32) {
    %c0_i32 = arith.constant 0 : i32
    %c0_i32_0 = arith.constant 0 : i32
    %c0_i32_1 = arith.constant 0 : i32
    return %c0_i32, %c0_i32_0, %arg0 : i32, i32, i32
  }
  func.func @transform_2(%arg0: i32) -> (i32, i32) {
    %c0_i32 = arith.constant 0 : i32
    %c0_i32_0 = arith.constant 0 : i32
    return %c0_i32, %arg0 : i32, i32
  }
}

</mosaic_0001>

<bundles_post_ra>
// kernel: tpu_custom_call.1
= control target key start
LH: loop header
LB: loop body
LE: loop exit
PB: predicated region body
PF: predicated region fallthrough
CT: control target
= control target key end

     0   :  { %7 = vsyncpa [#allocation3], 0  ;;  %s163_s12 = smov [#allocation2]   ;;  %s236_s0 = inlined_call_operand.vmem [shape: f32[6], index: 0, kind: input, shape index: {}]   ;;  %s237_s1 = inlined_call_operand.vmem [shape: f32[4,16,2], index: 1, kind: input, shape index: {}]   ;;  %s238_s2 = inlined_call_operand.vmem [shape: f32[6,2], index: 2, kind: output, shape index: {}]  }
   0x1   :  { %s13_s11 = sshll.u32 %s236_s0, 4  ;;  %s14_s11 = int_to_ptr.vmem [resolvable:$true] %s13_s11 }
   0x2   :  { %16 = dma.vmem_to_smem %s14_s11, 16, %s163_s12, [#allocation3]  }
   0x3   :  { %161 = dma.done.wait [#allocation3], 16  }
   0x4   :  { %162 = vsyncadd [#allocation3], 4294967280 }
   0x5   :  { %23 = sfence }
   0x6   :  { %v24_v0 = vld [vmem:[%s237_s1] sm:$0xff]  ;;  %v25_v1 = vld [vmem:[%s237_s1 + $0x8] sm:$0xff]  ;;  %v137_v2 = vld [vmem:[%s237_s1 + $0x10] sm:$0xff]  ;;  %vm31_vm0 = vcmask 15360   ;;  %s216_s28 = sld [smem:[#allocation2 + $0x1]]  ;;  %vm120_vm1 = vcmask 1040384  }
   0x7   :  { %v138_v3 = vld [vmem:[%s237_s1 + $0x18] sm:$0xff]  ;;  %v29_v4 = vmul.f32 %v137_v2, %v24_v0  ;;  %v139_v5 = vld [vmem:[%s237_s1 + $0x20] sm:$0xff]  ;;  %v140_v6 = vld [vmem:[%s237_s1 + $0x28] sm:$0xff]  ;;  %s218_s29 = sld [smem:[#allocation2 + $0x2]]  ;;  %vm122_vm2 = vcmask 1041408   ;;  %vm124_vm3 = vcmask 1042432  }
   0x8   :  { %v30_v7 = vmul.f32 %v138_v3, %v25_v1  ;;  %v47_v8 = vmul.f32 %v139_v5, %v24_v0  ;;  %v48_v9 = vmul.f32 %v140_v6, %v25_v1  ;;  %v142_v10 = vld [vmem:[%s237_s1 + $0x30] sm:$0xff]  ;;  %v143_v11 = vld [vmem:[%s237_s1 + $0x38] sm:$0xff]  ;;  %v78_v12 = vmul.f32 %v139_v5, %v137_v2  ;;  %s213_s1 = sld [smem:[#allocation2]] }
   0x9   :  { %v32_v13 = vsel %vm31_vm0, %v29_v4, 0.0  ;;  %v64_v14 = vmul.f32 %v142_v10, %v24_v0  ;;  %v65_v15 = vmul.f32 %v143_v11, %v25_v1  ;;  %v79_v16 = vmul.f32 %v140_v6, %v138_v3  ;;  %s221_s30 = sld [smem:[#allocation2 + $0x3]] }
   0xa   :  { %v33_v17 = vsel %vm31_vm0, %v30_v7, 0.0  ;;  %v49_v18 = vsel %vm31_vm0, %v47_v8, 0.0  ;;  %v50_v19 = vsel %vm31_vm0, %v48_v9, 0.0  ;;  %v80_v20 = vsel %vm31_vm0, %v78_v12, 0.0  ;;  %s226_s3 = sld [smem:[#allocation2 + $0x4]] }
   0xb   :  { %v34_v21 = vadd.f32 %v33_v17, %v32_v13  ;;  %v51_v22 = vadd.f32 %v50_v19, %v49_v18  ;;  %v66_v23 = vsel %vm31_vm0, %v64_v14, 0.0  ;;  %v67_v24 = vsel %vm31_vm0, %v65_v15, 0.0  ;;  %s147_s4 = sld [smem:[#allocation2 + $0x5]] }
   0xc   :  { %v68_v25 = vadd.f32 %v67_v24, %v66_v23  ;;  %v81_v26 = vsel %vm31_vm0, %v79_v16, 0.0  ;;  %v92_v27 = vmul.f32 %v142_v10, %v137_v2  ;;  %v93_v32 = vmul.f32 %v143_v11, %v138_v3 }
   0xd   :  { %v35_v28 = vrot.slane %v34_v21, 4  ;;  %v52_v29 = vrot.slane %v51_v22, 4  ;;  %v82_v30 = vadd.f32 %v81_v26, %v80_v20  ;;  %v106_v39 = vmul.f32 %v142_v10, %v139_v5 }
   0xe   :  { %v69_v31 = vrot.slane %v68_v25, 4  ;;  %v94_v33 = vsel %vm31_vm0, %v92_v27, 0.0  ;;  %v95_v38 = vsel %vm31_vm0, %v93_v32, 0.0  ;;  %v107_v45 = vmul.f32 %v143_v11, %v140_v6 }
   0xf   :  { %v36_v34 = vadd.f32 %v35_v28, %v34_v21  ;;  %v53_v35 = vadd.f32 %v52_v29, %v51_v22  ;;  %v83_v36 = vrot.slane %v82_v30, 4  ;;  %v96_v43 = vadd.f32 %v95_v38, %v94_v33 }
  0x10   :  { %v70_v37 = vadd.f32 %v69_v31, %v68_v25  ;;  %v108_v46 = vsel %vm31_vm0, %v106_v39, 0.0  ;;  %v42_v51 = vstv %s213_s1  ;;  %v109_v53 = vsel %vm31_vm0, %v107_v45, 0.0 }
  0x11   :  { %v37_v40 = vrot.slane %v36_v34, 2  ;;  %v54_v41 = vrot.slane %v53_v35, 2  ;;  %v84_v42 = vadd.f32 %v83_v36, %v82_v30  ;;  %v97_v50 = vrot.slane %v96_v43, 4 }
  0x12   :  { %v71_v44 = vrot.slane %v70_v37, 2  ;;  %v59_v58 = vstv %s216_s28  ;;  %v76_v60 = vstv %s218_s29  ;;  %v110_v61 = vadd.f32 %v109_v53, %v108_v46 }
  0x13   :  { %v38_v47 = vadd.f32 %v37_v40, %v36_v34  ;;  %v55_v48 = vadd.f32 %v54_v41, %v53_v35  ;;  %v85_v49 = vrot.slane %v84_v42, 2  ;;  %v98_v57 = vadd.f32 %v97_v50, %v96_v43 }
  0x14   :  { %v72_v52 = vadd.f32 %v71_v44, %v70_v37  ;;  %v90_v3 = vstv %s221_s30  ;;  %v111_v4 = vrot.slane %v110_v61, 4  ;;  %v104_v14 = vstv %s226_s3 }
  0x15   :  { %v39_v54 = vrot.slane %v38_v47, 1  ;;  %v56_v55 = vrot.slane %v55_v48, 1  ;;  %v86_v56 = vadd.f32 %v85_v49, %v84_v42  ;;  %v99_v1 = vrot.slane %v98_v57, 2 }
  0x16   :  { %v73_v59 = vrot.slane %v72_v52, 1  ;;  %v112_v10 = vadd.f32 %v111_v4, %v110_v61  ;;  %vm126_vm4 = vcmask 1043456   ;;  %v118_v22 = vstv %s147_s4 }
  0x17   :  { %v40_v62 = vadd.f32 %v39_v54, %v38_v47  ;;  %v57_v63 = vadd.f32 %v56_v55, %v55_v48  ;;  %v87_v0 = vrot.slane %v86_v56, 1  ;;  %v100_v8 = vadd.f32 %v99_v1, %v98_v57 }
  0x18   :  { %v74_v2 = vadd.f32 %v73_v59, %v72_v52  ;;  %v113_v15 = vrot.slane %v112_v10, 2  ;;  %vm128_vm5 = vcmask 1044480   ;;  %vm130_vm6 = vcmask 13312  }
  0x19   :  { %v43_v5 = vmul.f32 %v42_v51, %v40_v62  ;;  %v60_v6 = vmul.f32 %v59_v58, %v57_v63  ;;  %v88_v7 = vadd.f32 %v87_v0, %v86_v56  ;;  %v101_v11 = vrot.slane %v100_v8, 1 }
  0x1a   :  { %v77_v9 = vmul.f32 %v76_v60, %v74_v2  ;;  %v114_v18 = vadd.f32 %v113_v15, %v112_v10 }
  0x1b   :  { %v121_v12 = vsel %vm120_vm1, %v43_v5, %v60_v6  ;;  %v91_v13 = vmul.f32 %v90_v3, %v88_v7  ;;  %v102_v16 = vadd.f32 %v101_v11, %v100_v8 }
  0x1c   :  { %v123_v17 = vsel %vm122_vm2, %v121_v12, %v77_v9  ;;  %v115_v20 = vrot.slane %v114_v18, 1 }
  0x1d   :  { %v105_v19 = vmul.f32 %v104_v14, %v102_v16  ;;  %v125_v21 = vsel %vm124_vm3, %v123_v17, %v91_v13 }
  0x1e   :  { %v116_v23 = vadd.f32 %v115_v20, %v114_v18 }
  0x1f   :  { %v127_v24 = vsel %vm126_vm4, %v125_v21, %v105_v19 }
  0x20   :  { %v119_v25 = vmul.f32 %v118_v22, %v116_v23 }
  0x22   :  { %v129_v26 = vsel %vm128_vm5, %v127_v24, %v119_v25 }
  0x23   :  { %131 = vst.msk [vmem:[%s238_s2] sm:$0x3f] %vm130_vm6, %v129_v26 }
  0x24   :  { %136 = vsyncpa [#allocation3], 1 }

</bundles_post_ra>
